<compile_context>
chip_gen: v7x
topology: tpu7x:2x2x1
jax: 0.10.0
libtpu: 0.0.40
codegen_flags: <defaults>
</compile_context>

<pallas_src>
import functools
import math

import jax
import jax.numpy as jnp
from jax.experimental import pallas as pl
from jax.experimental.pallas import tpu as pltpu


def _round_up(x, m):
    return ((x + m - 1) // m) * m


def _largest_divisor_tile(dim, cap, align):
    """Largest multiple of `align` that divides `dim` and is <= cap.

    `dim` is assumed to already be a multiple of `align`, so `align` itself is
    always a valid fallback.
    """
    best = align
    for t in range(align, min(cap, dim) + 1, align):
        if dim % t == 0:
            best = t
    return best


def _masked_linear_kernel(x_ref, w_ref, b_ref, o_ref, acc_ref):
    """One (tm, tn) output tile, accumulating over the K grid axis (axis 2).

    x_ref  : (tm, tk) f32  activation tile
    w_ref  : (tk, tn) f32  K-major, mask-folded weight tile
    b_ref  : (1,  tn) f32  bias tile (added only in the K epilogue)
    o_ref  : (tm, tn)      output tile
    acc_ref: (tm, tn) f32  VMEM accumulator scratch
    """
    k = pl.program_id(2)
    part = jnp.dot(x_ref[...], w_ref[...], preferred_element_type=jnp.float32)

    @pl.when(k == 0)
    def _():
        acc_ref[...] = part          # first K step: write, no zero-init store

    @pl.when(k > 0)
    def _():
        acc_ref[...] += part

    @pl.when(k == pl.num_programs(2) - 1)
    def _():
        o_ref[...] = (acc_ref[...] + b_ref[...]).astype(o_ref.dtype)


def prepare_masked_linear_params(weight, mask, bias=None, *, tn=None, tk=None,
                                 split_n_for_two_cores=True):
    """One-time (weight-load time) prep: fold mask, transpose to K-major, pad.

    Returns a dict of padded device arrays + static tiling metadata consumed by
    masked_linear_prepared().  Nothing here runs per forward call.
    """
    out_features, in_features = weight.shape
    N = _round_up(out_features, 128)
    K = _round_up(in_features, 128)

    if tn is None:
        tn = _largest_divisor_tile(N, 512, 128)
    if tk is None:
        tk = _largest_divisor_tile(K, 1024, 128)

    # Guarantee >=2 blocks on the parallel N axis when possible so both v7x
    # TensorCores get work even when M//tm == 1 (small-batch inference).
    if split_n_for_two_cores and N // tn < 2 and N >= 256:
        cand = _largest_divisor_tile(N, N // 2, 128)
        if N % cand == 0 and N // cand >= 2:
            tn = cand

    # Fold the pruning mask into the weight once and lay it out K-major.
    w_eff = (weight * mask.astype(weight.dtype)).T            # (in, out)
    wt_p = jnp.pad(w_eff, ((0, K - in_features), (0, N - out_features)))

    b = bias if bias is not None else jnp.zeros((out_features,), weight.dtype)
    b_p = jnp.pad(b[None, :].astype(weight.dtype), ((0, 0), (0, N - out_features)))

    return {
        "wt": wt_p,                  # (K, N) f32, mask already applied
        "b": b_p,                    # (1, N) f32
        "out_features": out_features,
        "tn": tn,
        "tk": tk,
    }


@functools.partial(jax.jit, static_argnames=("out_features", "tn", "tk", "tm_cap"))
def masked_linear_prepared(x, wt_p, b_p, *, out_features, tn, tk, tm_cap=256):
    """Hot-path forward: y = x @ wt_p + b_p (mask already folded into wt_p)."""
    batch, in_features = x.shape
    K, N = wt_p.shape

    M = _round_up(batch, 8)
    tm = _largest_divisor_tile(M, tm_cap, 8)

    # Only the activations are padded per call; weight-side prep is cached.
    x_p = jnp.pad(x, ((0, M - batch), (0, K - in_features)))

    grid = (M // tm, N // tn, K // tk)

    # Explicit VMEM budget: double-buffered x/w tiles + out + f32 accumulator.
    itemsize = 4
    working_set = (2 * (tm * tk + tk * tn) + 3 * tm * tn + 2 * tn) * itemsize
    vmem_limit = min(48 * 1024 * 1024,
                     max(16 * 1024 * 1024, 2 * working_set))

    out = pl.pallas_call(
        _masked_linear_kernel,
        out_shape=jax.ShapeDtypeStruct((M, N), x.dtype),
        grid_spec=pltpu.PrefetchScalarGridSpec(
            num_scalar_prefetch=0,
            grid=grid,
            in_specs=[
                pl.BlockSpec((tm, tk), lambda i, j, k: (i, k)),  # x
                pl.BlockSpec((tk, tn), lambda i, j, k: (k, j)),  # (weight*mask).T
                pl.BlockSpec((1, tn), lambda i, j, k: (0, j)),   # bias
            ],
            out_specs=pl.BlockSpec((tm, tn), lambda i, j, k: (i, j)),
            scratch_shapes=[pltpu.VMEM((tm, tn), jnp.float32)],
        ),
        compiler_params=pltpu.CompilerParams(
            dimension_semantics=("parallel", "parallel", "arbitrary"),
            vmem_limit_bytes=int(vmem_limit)),
    )(x_p, wt_p, b_p)

    return out[:batch, :out_features]


def masked_linear(x, weight, mask, bias=None):
    """Convenience one-shot API (prep + forward). Prefer prepare_* + *_prepared
    when calling repeatedly with fixed weights."""
    p = prepare_masked_linear_params(weight, mask, bias)
    return masked_linear_prepared(
        x, p["wt"], p["b"], out_features=p["out_features"],
        tn=p["tn"], tk=p["tk"])


def init_masked_linear_params(key, in_features, out_features):
    """Deterministic init matching nn.Linear / MaskedLinear.reset_parameters."""
    kw, kb, km = jax.random.split(key, 3)
    # kaiming_uniform_(a=sqrt(5)) on (out, in) => uniform(-1/sqrt(in), 1/sqrt(in))
    bound = 1.0 / math.sqrt(in_features)
    weight = jax.random.uniform(
        kw, (out_features, in_features), jnp.float32, -bound, bound)
    bias = jax.random.uniform(kb, (out_features,), jnp.float32, -bound, bound)
    # Synthetic pruning mask (uint8): ~50% density so masking is observable.
    mask = (jax.random.uniform(km, (out_features, in_features)) > 0.5
            ).astype(jnp.uint8)
    return weight, mask, bias


def _reference(x, weight, mask, bias):
    y = x @ (weight * mask.astype(weight.dtype)).T
    if bias is not None:
        y = y + bias[None, :]
    return y


if __name__ == "__main__":
    key = jax.random.PRNGKey(0)

    # Case 1: small shapes consistent with the module (single grid block).
    batch, in_features, out_features = 8, 32, 16
    kx, kp, key = jax.random.split(key, 3)
    x = jax.random.normal(kx, (batch, in_features), jnp.float32)
    weight, mask, bias = init_masked_linear_params(kp, in_features, out_features)

    params = prepare_masked_linear_params(weight, mask, bias)   # one-time prep
    y = jax.block_until_ready(masked_linear_prepared(
        x, params["wt"], params["b"], out_features=params["out_features"],
        tn=params["tn"], tk=params["tk"]))
    y_ref = _reference(x, weight, mask, bias)
    assert jnp.allclose(y, y_ref, atol=1e-4, rtol=1e-4), "mismatch (small case)"

    # Case 2: multiple N blocks + single large K step; also tests bias=None.
    batch2, in2, out2 = 16, 1024, 384
    kx2, kp2, _ = jax.random.split(key, 3)
    x2 = jax.random.normal(kx2, (batch2, in2), jnp.float32)
    w2, m2, b2 = init_masked_linear_params(kp2, in2, out2)

    p2 = prepare_masked_linear_params(w2, m2, b2)
    y2 = jax.block_until_ready(masked_linear_prepared(
        x2, p2["wt"], p2["b"], out_features=p2["out_features"],
        tn=p2["tn"], tk=p2["tk"]))
    y2_ref = _reference(x2, w2, m2, b2)
    assert jnp.allclose(y2, y2_ref, atol=1e-4, rtol=1e-4), "mismatch (tiled case)"

    y3 = jax.block_until_ready(masked_linear(x2, w2, m2, None))  # bias=None path
    y3_ref = _reference(x2, w2, m2, None)
    assert jnp.allclose(y3, y3_ref, atol=1e-4, rtol=1e-4), "mismatch (no-bias case)"

    print("KERNEL_OK")
</pallas_src>

<mosaic_0001>
module attributes {stable_mosaic.version = 11 : i64} {
  func.func @_masked_linear_kernel(%arg0: i32, %arg1: i32, %arg2: i32, %arg3: memref<8x128xf32, #tpu.memory_space<vmem>>, %arg4: memref<128x128xf32, #tpu.memory_space<vmem>>, %arg5: memref<1x128xf32, #tpu.memory_space<vmem>>, %arg6: memref<8x128xf32, #tpu.memory_space<vmem>>, %arg7: memref<8x128xf32, #tpu.memory_space<vmem>>) attributes {dimension_semantics = [#tpu.dimension_semantics<parallel>, #tpu.dimension_semantics<parallel>, #tpu.dimension_semantics<arbitrary>], iteration_bounds = array<i64: 1, 1, 1>, scalar_prefetch = 0 : i64, scratch_operands = 1 : i64, tpu.core_type = #tpu.core_type<tc>, window_params = [{transform_indices = @transform_0, window_bounds = array<i64: 8, 128>}, {transform_indices = @transform_1, window_bounds = array<i64: 128, 128>}, {transform_indices = @transform_2, window_bounds = array<i64: 1, 128>}, {transform_indices = @transform_3, window_bounds = array<i64: 8, 128>}]} {
    %c0 = arith.constant 0 : index
    %c0_0 = arith.constant 0 : index
    %0 = vector.load %arg3[%c0, %c0_0] : memref<8x128xf32, #tpu.memory_space<vmem>>, vector<8x128xf32>
    %c0_1 = arith.constant 0 : index
    %c0_2 = arith.constant 0 : index
    %1 = vector.load %arg4[%c0_1, %c0_2] : memref<128x128xf32, #tpu.memory_space<vmem>>, vector<128x128xf32>
    %cst = arith.constant dense<0.000000e+00> : vector<8x128xf32>
    %2 = tpu.matmul %0, %1, %cst {dimension_numbers = #tpu.dot_dimension_numbers<[1], [0], [0], [1], [0, 0, 1, 1], [], []>} : vector<8x128xf32>, vector<128x128xf32>, vector<8x128xf32> -> vector<8x128xf32>
    %c0_i32 = arith.constant 0 : i32
    %3 = arith.cmpi eq, %arg2, %c0_i32 : i32
    %4 = arith.extui %3 : i1 to i32
    %c0_i32_3 = arith.constant 0 : i32
    %5 = arith.cmpi ne, %4, %c0_i32_3 : i32
    scf.if %5 {
      %c0_8 = arith.constant 0 : index
      %c0_9 = arith.constant 0 : index
      %12 = vector.load %arg7[%c0_8, %c0_9] : memref<8x128xf32, #tpu.memory_space<vmem>>, vector<8x128xf32>
      tpu.vector_store %arg7[%c0_8, %c0_9], %2 {strides = array<i32>} : memref<8x128xf32, #tpu.memory_space<vmem>>, vector<8x128xf32>,
    } else {
    }
    %c0_i32_4 = arith.constant 0 : i32
    %6 = arith.cmpi sgt, %arg2, %c0_i32_4 : i32
    %7 = arith.extui %6 : i1 to i32
    %c0_i32_5 = arith.constant 0 : i32
    %8 = arith.cmpi ne, %7, %c0_i32_5 : i32
    scf.if %8 {
      %c0_8 = arith.constant 0 : index
      %c0_9 = arith.constant 0 : index
      %12 = vector.load %arg7[%c0_8, %c0_9] : memref<8x128xf32, #tpu.memory_space<vmem>>, vector<8x128xf32>
      %13 = arith.addf %12, %2 : vector<8x128xf32>
      %c0_10 = arith.constant 0 : index
      %c0_11 = arith.constant 0 : index
      %14 = vector.load %arg7[%c0_10, %c0_11] : memref<8x128xf32, #tpu.memory_space<vmem>>, vector<8x128xf32>
      tpu.vector_store %arg7[%c0_10, %c0_11], %13 {strides = array<i32>} : memref<8x128xf32, #tpu.memory_space<vmem>>, vector<8x128xf32>,
    } else {
    }
    %c0_i32_6 = arith.constant 0 : i32
    %9 = arith.cmpi eq, %arg2, %c0_i32_6 : i32
    %10 = arith.extui %9 : i1 to i32
    %c0_i32_7 = arith.constant 0 : i32
    %11 = arith.cmpi ne, %10, %c0_i32_7 : i32
    scf.if %11 {
      %c0_8 = arith.constant 0 : index
      %c0_9 = arith.constant 0 : index
      %12 = vector.load %arg7[%c0_8, %c0_9] : memref<8x128xf32, #tpu.memory_space<vmem>>, vector<8x128xf32>
      %c0_10 = arith.constant 0 : index
      %c0_11 = arith.constant 0 : index
      %13 = vector.load %arg5[%c0_10, %c0_11] : memref<1x128xf32, #tpu.memory_space<vmem>>, vector<1x128xf32>
      %14 = vector.broadcast %13 : vector<1x128xf32> to vector<8x128xf32>
      %15 = arith.addf %12, %14 : vector<8x128xf32>
      %c0_12 = arith.constant 0 : index
      %c0_13 = arith.constant 0 : index
      %16 = vector.load %arg6[%c0_12, %c0_13] : memref<8x128xf32, #tpu.memory_space<vmem>>, vector<8x128xf32>
      tpu.vector_store %arg6[%c0_12, %c0_13], %15 {strides = array<i32>} : memref<8x128xf32, #tpu.memory_space<vmem>>, vector<8x128xf32>,
    } else {
    }
    return
  }
  func.func @transform_0(%arg0: i32, %arg1: i32, %arg2: i32) -> (i32, i32) {
    %c0_i32 = arith.constant 0 : i32
    return %arg0, %arg2 : i32, i32
  }
  func.func @transform_1(%arg0: i32, %arg1: i32, %arg2: i32) -> (i32, i32) {
    %c0_i32 = arith.constant 0 : i32
    return %arg2, %arg1 : i32, i32
  }
  func.func @transform_2(%arg0: i32, %arg1: i32, %arg2: i32) -> (i32, i32) {
    %c0_i32 = arith.constant 0 : i32
    %c0_i32_0 = arith.constant 0 : i32
    return %c0_i32, %arg1 : i32, i32
  }
  func.func @transform_3(%arg0: i32, %arg1: i32, %arg2: i32) -> (i32, i32) {
    %c0_i32 = arith.constant 0 : i32
    return %arg0, %arg1 : i32, i32
  }
}

</mosaic_0001>

<bundles_post_ra>
// kernel: masked_linear_prepared.1
= control target key start
LH: loop header
LB: loop body
LE: loop exit
PB: predicated region body
PF: predicated region fallthrough
CT: control target
= control target key end

     0   :  { %8 = vsyncpa [#allocation4], 0  ;;  %s345_s0 = inlined_call_operand.vmem [shape: f32[8,128], index: 0, kind: input, shape index: {}]   ;;  %s346_s1 = inlined_call_operand.hbm [shape: f32[128,128], index: 1, kind: input, shape index: {}]   ;;  %s347_s2 = inlined_call_operand.vmem [shape: f32[1,128], index: 2, kind: input, shape index: {}]   ;;  %s348_s3 = inlined_call_operand.hbm [shape: f32[8,128], index: 3, kind: output, shape index: {}]  }
   0x1   :  { %9 = vsyncpa [#allocation5], 0  ;;  %s288_s12 = smov [#allocation3]   ;;  %s240_s16 = scalar_lea.hbm %s346_s1, 2048 }
   0x2   :  { %s17_s13 = sshll.u32 %s288_s12, 4  ;;  %p241_p0 = scmp.ne.s32.totalorder %s346_s1, %s240_s16  ;;  %s18_s13 = int_to_ptr.vmem [resolvable:$true] %s17_s13 }
   0x3   :  { %p244_p1 = scmp.lt.u32.totalorder %s240_s16, %s346_s1 }
   0x5   :  { %p246_p2 = pnand %p244_p1, %p241_p0 }
   0x7   :  { %249 = shalt.err (!%p246_p2)
}
   0x8   :  { %s250_s21 = scalar_lea.vmem %s18_s13, 2048  ;;  %p255_p4 = scmp.lt.s32.totalorder %s18_s13, %s18_s13 }
   0x9   :  { %p251_p3 = scmp.ne.s32.totalorder %s18_s13, %s250_s21  ;;  %p256_p5 = scmp.lt.s32.totalorder %s250_s21, %s250_s21 }
   0xb   :  { %p257_p6 = por %p256_p5, %p255_p4 }
   0xd   :  { %p258_p7 = pnand %p257_p6, %p251_p3 }
   0xf   :  { %261 = shalt.err (!%p258_p7)
}
  0x10   :  { %s289_s22 = smov 128   ;;  %s290_s23 = smov 8  }
  0x11   :  { %23 = dma.hbm_to_vmem [thread:$0]  %s346_s1, 2048, %s18_s13, [#allocation4], %s289_s22, %s289_s22, %s290_s23  }
  0x12   :  { %284 = dma.done.wait [#allocation4], 2048  }
  0x13   :  { %285 = vsyncadd [#allocation4], 4294965248  ;;  %v291_v0 = vmov 0.0|0.0   ;;  %vm292_vm0 = vmmov 0   ;;  %v293_v1 = vmov 0.0   ;;  %v30_v2 = vld [vmem:[#allocation3] sm:$0xff] }
  0x14   :  { %209 = vmatprep.subr.bf16.mxu0 %v291_v0  ;;  %206 = vmatprep.mubr.msk.f32.mxu0 %vm292_vm0, %v293_v1  ;;  %v31_v3 = vld [vmem:[#allocation3 + $0x8] sm:$0xff]  ;;  %v32_v4 = vld [vmem:[#allocation3 + $0x10] sm:$0xff]  ;;  %v33_v6 = vld [vmem:[#allocation3 + $0x18] sm:$0xff]  ;;  %s294_s29 = smov [#allocation6]  }
  0x15   :  { %v210_v5 = vpack.c.bf16 %v31_v3, %v30_v2  ;;  %v213_v7 = vpack.c.bf16 %v33_v6, %v32_v4  ;;  %v34_v8 = vld [vmem:[#allocation3 + $0x20] sm:$0xff]  ;;  %v35_v9 = vld [vmem:[#allocation3 + $0x28] sm:$0xff]  ;;  %v36_v11 = vld [vmem:[#allocation3 + $0x30] sm:$0xff]  ;;  %s147_s30 = sshll.u32 %s294_s29, 4  ;;  %s148_s30 = int_to_ptr.vmem [resolvable:$true] %s147_s30 }
  0x16   :  { %v216_v10 = vpack.c.bf16 %v35_v9, %v34_v8  ;;  %v37_v12 = vld [vmem:[#allocation3 + $0x38] sm:$0xff]  ;;  %v38_v14 = vld [vmem:[#allocation3 + $0x40] sm:$0xff]  ;;  %v39_v15 = vld [vmem:[#allocation3 + $0x48] sm:$0xff]  ;;  %s262_s4 = scalar_lea.vmem %s148_s30, 128  ;;  %p267_p9 = scmp.lt.s32.totalorder %s148_s30, %s148_s30 }
  0x17   :  { %211 = vmatpush3.bf16.msra.mxu0 %v210_v5  ;;  %v219_v13 = vpack.c.bf16 %v37_v12, %v36_v11  ;;  %v222_v16 = vpack.c.bf16 %v39_v15, %v38_v14  ;;  %v40_v17 = vld [vmem:[#allocation3 + $0x50] sm:$0xff]  ;;  %v41_v18 = vld [vmem:[#allocation3 + $0x58] sm:$0xff]  ;;  %v42_v20 = vld [vmem:[#allocation3 + $0x60] sm:$0xff]  ;;  %p263_p8 = scmp.ne.s32.totalorder %s148_s30, %s262_s4  ;;  %p268_p10 = scmp.lt.s32.totalorder %s262_s4, %s262_s4 }
  0x18   :  { %212 = vmatprep.subr.bf16.mxu0 %v291_v0  ;;  %v225_v19 = vpack.c.bf16 %v41_v18, %v40_v17  ;;  %v43_v21 = vld [vmem:[#allocation3 + $0x68] sm:$0xff]  ;;  %v44_v23 = vld [vmem:[#allocation3 + $0x70] sm:$0xff]  ;;  %v45_v24 = vld [vmem:[#allocation3 + $0x78] sm:$0xff] }
  0x19   :  { %v228_v22 = vpack.c.bf16 %v43_v21, %v42_v20  ;;  %v231_v25 = vpack.c.bf16 %v45_v24, %v44_v23  ;;  %v29_v26 = vld [vmem:[%s345_s0] sm:$0xff]  ;;  %p269_p11 = por %p268_p10, %p267_p9 }
  0x1a   :  { %v156_v27 = vld [vmem:[%s347_s2] ss:$0 sm:$0xff] }
  0x1b   :  { %214 = vmatpush3.bf16.msra.mxu0 %v213_v7  ;;  %p270_p12 = pnand %p269_p11, %p263_p8 }
  0x1c   :  { %215 = vmatprep.subr.bf16.mxu0 %v291_v0 }
  0x1f   :  { %217 = vmatpush3.bf16.msra.mxu0 %v216_v10 }
  0x20   :  { %218 = vmatprep.subr.bf16.mxu0 %v291_v0 }
  0x23   :  { %220 = vmatpush3.bf16.msra.mxu0 %v219_v13 }
  0x24   :  { %221 = vmatprep.subr.bf16.mxu0 %v291_v0 }
  0x27   :  { %223 = vmatpush3.bf16.msra.mxu0 %v222_v16 }
  0x28   :  { %224 = vmatprep.subr.bf16.mxu0 %v291_v0 }
  0x2b   :  { %226 = vmatpush3.bf16.msra.mxu0 %v225_v19 }
  0x2c   :  { %227 = vmatprep.subr.bf16.mxu0 %v291_v0 }
  0x2f   :  { %229 = vmatpush3.bf16.msra.mxu0 %v228_v22 }
  0x30   :  { %230 = vmatprep.subr.bf16.mxu0 %v291_v0 }
  0x33   :  { %232 = vmatpush3.bf16.msra.mxu0 %v231_v25 }
  0x36   :  { %207 = vmatmul.mubr.f32.vlgmr.msra.gmra.mrb[0].mxu0 %v29_v26 }
 0x109   :  { %v112_v28 = vpop.f32.mrb[0].mxu0 }
 0x10a   :  { %v139_v29 = vadd.f32 %v156_v27, %v112_v28  ;;  %v208_v30 = vpop.f32.mrb[1].mxu0 }
 0x10c   :  { %140 = vst [vmem:[#allocation6] sm:$0xff] %v139_v29 }
 0x10d   :  { %273 = shalt.err (!%p270_p12)
}
 0x10e   :  { %s274_s6 = scalar_lea.hbm %s348_s3, 128 }
 0x10f   :  { %p275_p13 = scmp.ne.s32.totalorder %s348_s3, %s274_s6  ;;  %p278_p0 = scmp.lt.u32.totalorder %s274_s6, %s348_s3 }
 0x111   :  { %p280_p1 = pnand %p278_p0, %p275_p13 }
 0x113   :  { %283 = shalt.err (!%p280_p1)
}
 0x114   :  { %150 = dma.vmem_to_hbm [thread:$0]  %s148_s30, 128, %s348_s3, [#allocation5]  }
 0x115   :  { %286 = dma.done.wait [#allocation5], 128  }
 0x116   :  { %287 = vsyncadd [#allocation5], 4294967168 }
 0x117   :  { %154 = vsyncpa [#allocation4], 1 }
 0x118   :  { %155 = vsyncpa [#allocation5], 1 }

</bundles_post_ra>
